<compile_context>
chip_gen: v7x
topology: tpu7x:2x2x1
jax: 0.10.0
libtpu: 0.0.40
codegen_flags: <defaults>
</compile_context>

<pallas_src>
import jax
import jax.numpy as jnp
from jax.experimental import pallas as pl
from jax.experimental.pallas import tpu as pltpu


def film_kernel(x_ref, cond_ref, w_ref, b_ref, o_ref):
    # x_ref:    (TB, D_OUT)       inputs tile
    # cond_ref: (TB, D_COND)      conditioning tile
    # w_ref:    (D_COND, 2*D_OUT) fused [W_scale^T | W_shift^T]   (single-buffered)
    # b_ref:    (1, 2*D_OUT)      fused [b_scale   | b_shift]     (single-buffered)
    # o_ref:    (TB, D_OUT)
    d_out = o_ref.shape[-1]
    # One wide MXU pass computes gamma and beta together; f32 accumulation.
    gb = jnp.dot(cond_ref[...], w_ref[...],
                 preferred_element_type=jnp.float32) + b_ref[...]
    gamma = gb[:, :d_out]      # static, lane-aligned split (d_out % 128 == 0)
    beta = gb[:, d_out:]
    o_ref[...] = (gamma * x_ref[...].astype(jnp.float32) + beta).astype(o_ref.dtype)


def prepare_film_params(w_scale, b_scale, w_shift, b_shift):
    """One-time (per model, not per call) parameter prep: transpose + fuse.

    PyTorch Linear stores W as (d_out, d_cond); the kernel wants (d_cond, d_out)
    with scale/shift side by side so each tile needs a single wide dot.
    Keep the params in bf16 here if the model runs bf16: the MXU takes bf16
    natively and the kernel accumulates in f32 regardless.
    """
    d_out, d_cond = w_scale.shape
    assert d_out % 128 == 0, (
        "d_out must be a multiple of 128 for a lane-aligned gamma/beta split "
        "and unmasked stores (pad the model width offline).")
    w_cat = jnp.concatenate([w_scale.T, w_shift.T], axis=1)          # (d_cond, 2*d_out)
    b_cat = jnp.concatenate([b_scale, b_shift]).reshape(1, 2 * d_out)
    return w_cat, b_cat


def _sublane_multiple(itemsize):
    # f32 -> 8 rows, bf16 -> 16, int8/fp8 -> 32 (packed sublane tiling).
    return {4: 8, 2: 16, 1: 32}.get(itemsize, 8)


def _per_row_bytes(d_out, d_cond, x_itemsize, cond_itemsize):
    """VMEM bytes per batch row: double-buffered streaming tiles + in-kernel f32."""
    return (2 * d_out * x_itemsize        # inputs tile (x2 pipeline buffers)
            + 2 * d_out * x_itemsize      # output tile (x2 pipeline buffers)
            + 2 * d_cond * cond_itemsize  # cond tile   (x2 pipeline buffers)
            + 2 * d_out * 4               # gb = (tb, 2*d_out) f32 matmul result
            + d_out * 4)                  # f32 cast of the inputs tile


def _fixed_bytes(d_out, d_cond, w_itemsize, b_itemsize):
    """Single-buffered fused weight + bias."""
    return d_cond * 2 * d_out * w_itemsize + 2 * d_out * b_itemsize


def _choose_tb(batch, d_out, d_cond, x_itemsize, cond_itemsize, w_itemsize,
               b_itemsize, vmem_tile_budget):
    """Largest power-of-two batch tile (up to 4096 rows) that fits the VMEM budget."""
    sub = _sublane_multiple(x_itemsize)
    per_row = _per_row_bytes(d_out, d_cond, x_itemsize, cond_itemsize)
    fixed = _fixed_bytes(d_out, d_cond, w_itemsize, b_itemsize)
    max_rows = max((vmem_tile_budget - fixed) // per_row, sub)
    # Power of two in [sub, 4096]; big tiles amortize the ~0.35 us per-step overhead.
    tb = 1 << min(12, max(int(max_rows).bit_length() - 1, sub.bit_length() - 1))
    b_rounded = pl.cdiv(batch, sub) * sub
    tb = min(tb, b_rounded)                 # never larger than the (rounded) batch
    # v7x megacore: make sure the "parallel" batch axis has >= 2 steps for
    # mid/large batches so both TensorCores get work (no-op on v5e/v6e).
    if b_rounded >= 512 and pl.cdiv(b_rounded, tb) < 2:
        half = pl.cdiv(pl.cdiv(b_rounded, 2), sub) * sub
        tb = min(tb, half)
    return tb


def film_conditioning(inputs, cond_vector, w_cat, b_cat, *,
                      tb=None,
                      vmem_tile_budget=24 * 1024 * 1024,   # safe on v7x's 64 MiB part
                      vmem_limit_bytes=None):
    """Pallas FiLM forward. If cond_vector is None, returns inputs (PyTorch parity)."""
    if cond_vector is None:
        return inputs

    B, d_out = inputs.shape
    Bc, d_cond = cond_vector.shape
    assert B == Bc
    assert w_cat.shape == (d_cond, 2 * d_out)
    assert b_cat.shape == (1, 2 * d_out)
    assert d_out % 128 == 0, "d_out must be a multiple of 128 (see prepare_film_params)"
    # TODO(synk): for very large d_cond*d_out (single-buffered w_cat > ~8 MiB), add a
    # second lane-dense grid axis over d_out so the fused weight fits v7x VMEM.

    x_it = inputs.dtype.itemsize
    c_it = cond_vector.dtype.itemsize
    w_it = w_cat.dtype.itemsize
    b_it = b_cat.dtype.itemsize
    sub = _sublane_multiple(x_it)

    if tb is None:
        tb = _choose_tb(B, d_out, d_cond, x_it, c_it, w_it, b_it, vmem_tile_budget)
    assert tb % sub == 0, f"batch tile {tb} must be a multiple of {sub} for this dtype"

    # Ragged final block: no jnp.pad of inputs/cond and no out[:B] copy. OOB rows of
    # the last block read unspecified values and their writes are dropped; every valid
    # output row depends only on its own input/cond row, so results are exact.
    grid = (pl.cdiv(B, tb),)

    per_row = _per_row_bytes(d_out, d_cond, x_it, c_it)
    fixed = _fixed_bytes(d_out, d_cond, w_it, b_it)
    if vmem_limit_bytes is None:
        footprint = fixed + tb * per_row
        vmem_limit_bytes = min(int(footprint * 1.25) + (2 << 20), 128 << 20)

    # Free scheduling hint for XLA around the custom call (mem-bound kernel).
    cost = pl.CostEstimate(
        flops=2 * B * d_cond * (2 * d_out) + 3 * B * d_out,
        transcendentals=0,
        bytes_accessed=(2 * B * d_out * x_it            # inputs read + output write
                        + B * d_cond * c_it             # cond read
                        + d_cond * 2 * d_out * w_it     # fused weights
                        + 2 * d_out * b_it))            # fused bias

    const = pl.Buffered(1)   # weights/bias are grid-invariant: no double-buffering

    out = pl.pallas_call(
        film_kernel,
        out_shape=jax.ShapeDtypeStruct((B, d_out), inputs.dtype),
        grid_spec=pl.GridSpec(
            grid=grid,
            in_specs=[
                pl.BlockSpec((tb, d_out), lambda i: (i, 0)),            # inputs tile
                pl.BlockSpec((tb, d_cond), lambda i: (i, 0)),           # cond tile
                pl.BlockSpec((d_cond, 2 * d_out), lambda i: (0, 0),
                             pipeline_mode=const),                      # fused weights
                pl.BlockSpec((1, 2 * d_out), lambda i: (0, 0),
                             pipeline_mode=const),                      # fused bias
            ],
            out_specs=pl.BlockSpec((tb, d_out), lambda i: (i, 0)),      # lane-dense d_out
        ),
        compiler_params=pltpu.CompilerParams(
            dimension_semantics=("parallel",),   # batch steps shard across TCs (v7x)
            vmem_limit_bytes=vmem_limit_bytes,
        ),
        cost_estimate=cost,
    )(inputs, cond_vector, w_cat, b_cat)

    return out


def film_reference(inputs, cond_vector, w_scale, b_scale, w_shift, b_shift):
    if cond_vector is None:
        return inputs
    gamma = cond_vector @ w_scale.T + b_scale
    beta = cond_vector @ w_shift.T + b_shift
    return gamma * inputs + beta


if __name__ == "__main__":
    # Small, TPU-friendly shapes.
    B = 16        # batch
    D_COND = 32   # d_conditioning
    D_OUT = 128   # d_outputs

    key = jax.random.PRNGKey(0)
    k_x, k_c, k_ws, k_bs, k_wh, k_bh, k_x2, k_c2 = jax.random.split(key, 8)

    inputs = jax.random.normal(k_x, (B, D_OUT), dtype=jnp.float32)
    cond = jax.random.normal(k_c, (B, D_COND), dtype=jnp.float32)

    # PyTorch Linear layout: weight (d_out, d_cond), bias (d_out,).
    bound = 1.0 / (D_COND ** 0.5)
    w_scale = jax.random.uniform(k_ws, (D_OUT, D_COND), jnp.float32, -bound, bound)
    b_scale = jax.random.uniform(k_bs, (D_OUT,), jnp.float32, -bound, bound)
    w_shift = jax.random.uniform(k_wh, (D_OUT, D_COND), jnp.float32, -bound, bound)
    b_shift = jax.random.uniform(k_bh, (D_OUT,), jnp.float32, -bound, bound)

    # Parameter transpose/concat hoisted out of the per-call path (done once).
    w_cat, b_cat = prepare_film_params(w_scale, b_scale, w_shift, b_shift)

    # 1) Batch divisible by the tile.
    out = jax.block_until_ready(film_conditioning(inputs, cond, w_cat, b_cat))
    ref = film_reference(inputs, cond, w_scale, b_scale, w_shift, b_shift)
    assert out.shape == (B, D_OUT)
    assert jnp.allclose(out, ref, atol=1e-5, rtol=1e-5), "mismatch vs reference (even)"

    # 2) Ragged batch: ragged final block, no pad / no output slice round-trips.
    B2 = 20
    inputs2 = jax.random.normal(k_x2, (B2, D_OUT), dtype=jnp.float32)
    cond2 = jax.random.normal(k_c2, (B2, D_COND), dtype=jnp.float32)
    out2 = jax.block_until_ready(
        film_conditioning(inputs2, cond2, w_cat, b_cat, tb=16))
    ref2 = film_reference(inputs2, cond2, w_scale, b_scale, w_shift, b_shift)
    assert out2.shape == (B2, D_OUT)
    assert jnp.allclose(out2, ref2, atol=1e-5, rtol=1e-5), "mismatch vs reference (ragged)"

    # 3) cond_vector=None passthrough parity with the PyTorch module.
    assert film_conditioning(inputs, None, w_cat, b_cat) is inputs

    print("KERNEL_OK")
</pallas_src>

<mosaic_0001>
module attributes {stable_mosaic.version = 11 : i64} {
  func.func @film_kernel(%arg0: i32, %arg1: memref<16x128xf32, #tpu.memory_space<vmem>>, %arg2: memref<16x32xf32, #tpu.memory_space<vmem>>, %arg3: memref<32x256xf32, #tpu.memory_space<vmem>>, %arg4: memref<1x256xf32, #tpu.memory_space<vmem>>, %arg5: memref<16x128xf32, #tpu.memory_space<vmem>>) attributes {dimension_semantics = [#tpu.dimension_semantics<parallel>], iteration_bounds = array<i64: 1>, scalar_prefetch = 0 : i64, scratch_operands = 0 : i64, tpu.core_type = #tpu.core_type<tc>, window_params = [{transform_indices = @transform_0, window_bounds = array<i64: 16, 128>}, {transform_indices = @transform_1, window_bounds = array<i64: 16, 32>}, {pipeline_mode = #tpu.pipeline_mode<synchronous>, transform_indices = @transform_2, window_bounds = array<i64: 32, 256>}, {pipeline_mode = #tpu.pipeline_mode<synchronous>, transform_indices = @transform_3, window_bounds = array<i64: 1, 256>}, {transform_indices = @transform_4, window_bounds = array<i64: 16, 128>}]} {
    %c0 = arith.constant 0 : index
    %c0_0 = arith.constant 0 : index
    %0 = vector.load %arg2[%c0, %c0_0] : memref<16x32xf32, #tpu.memory_space<vmem>>, vector<16x32xf32>
    %c0_1 = arith.constant 0 : index
    %c0_2 = arith.constant 0 : index
    %1 = vector.load %arg3[%c0_1, %c0_2] : memref<32x256xf32, #tpu.memory_space<vmem>>, vector<32x256xf32>
    %cst = arith.constant dense<0.000000e+00> : vector<16x256xf32>
    %2 = tpu.matmul %0, %1, %cst {dimension_numbers = #tpu.dot_dimension_numbers<[1], [0], [0], [1], [0, 0, 1, 1], [], []>} : vector<16x32xf32>, vector<32x256xf32>, vector<16x256xf32> -> vector<16x256xf32>
    %c0_3 = arith.constant 0 : index
    %c0_4 = arith.constant 0 : index
    %3 = vector.load %arg4[%c0_3, %c0_4] : memref<1x256xf32, #tpu.memory_space<vmem>>, vector<1x256xf32>
    %4 = vector.broadcast %3 : vector<1x256xf32> to vector<16x256xf32>
    %5 = arith.addf %2, %4 : vector<16x256xf32>
    %6 = vector.extract_strided_slice %5 {offsets = [0, 0], sizes = [16, 128], strides = [1, 1]} : vector<16x256xf32> to vector<16x128xf32>
    %7 = vector.extract_strided_slice %5 {offsets = [0, 128], sizes = [16, 128], strides = [1, 1]} : vector<16x256xf32> to vector<16x128xf32>
    %c0_5 = arith.constant 0 : index
    %c0_6 = arith.constant 0 : index
    %8 = vector.load %arg1[%c0_5, %c0_6] : memref<16x128xf32, #tpu.memory_space<vmem>>, vector<16x128xf32>
    %9 = arith.mulf %6, %8 : vector<16x128xf32>
    %10 = arith.addf %9, %7 : vector<16x128xf32>
    %c0_7 = arith.constant 0 : index
    %c0_8 = arith.constant 0 : index
    %11 = vector.load %arg5[%c0_7, %c0_8] : memref<16x128xf32, #tpu.memory_space<vmem>>, vector<16x128xf32>
    tpu.vector_store %arg5[%c0_7, %c0_8], %10 {strides = array<i32>} : memref<16x128xf32, #tpu.memory_space<vmem>>, vector<16x128xf32>,
    return
  }
  func.func @transform_0(%arg0: i32) -> (i32, i32) {
    %c0_i32 = arith.constant 0 : i32
    %c0_i32_0 = arith.constant 0 : i32
    return %arg0, %c0_i32 : i32, i32
  }
  func.func @transform_1(%arg0: i32) -> (i32, i32) {
    %c0_i32 = arith.constant 0 : i32
    %c0_i32_0 = arith.constant 0 : i32
    return %arg0, %c0_i32 : i32, i32
  }
  func.func @transform_2(%arg0: i32) -> (i32, i32) {
    %c0_i32 = arith.constant 0 : i32
    %c0_i32_0 = arith.constant 0 : i32
    %c0_i32_1 = arith.constant 0 : i32
    return %c0_i32, %c0_i32_0 : i32, i32
  }
  func.func @transform_3(%arg0: i32) -> (i32, i32) {
    %c0_i32 = arith.constant 0 : i32
    %c0_i32_0 = arith.constant 0 : i32
    %c0_i32_1 = arith.constant 0 : i32
    return %c0_i32, %c0_i32_0 : i32, i32
  }
  func.func @transform_4(%arg0: i32) -> (i32, i32) {
    %c0_i32 = arith.constant 0 : i32
    %c0_i32_0 = arith.constant 0 : i32
    return %arg0, %c0_i32 : i32, i32
  }
}

</mosaic_0001>

<bundles_post_ra>
// kernel: tpu_custom_call.1
= control target key start
LH: loop header
LB: loop body
LE: loop exit
PB: predicated region body
PF: predicated region fallthrough
CT: control target
= control target key end

     0   :  { %9 = vsyncpa [#allocation3], 0  ;;  %s409_s0 = inlined_call_operand.hbm [shape: f32[16,128], index: 0, kind: input, shape index: {}]   ;;  %s410_s1 = inlined_call_operand.hbm [shape: f32[16,32], index: 1, kind: input, shape index: {}]   ;;  %s411_s2 = inlined_call_operand.hbm [shape: f32[32,256], index: 2, kind: input, shape index: {}]   ;;  %s412_s3 = inlined_call_operand.vmem [shape: f32[1,256], index: 3, kind: input, shape index: {}]   ;;  %s413_s4 = inlined_call_operand.hbm [shape: f32[16,128], index: 4, kind: output, shape index: {}]  }
   0x1   :  { %10 = vsyncpa [#allocation6], 0 }
   0x2   :  { %11 = vsyncpa [#allocation4], 0  ;;  %s308_s15 = smov [#allocation5]   ;;  %s309_s17 = smov [#allocation2]  }
   0x3   :  { %s29_s16 = sshll.u32 %s308_s15, 4  ;;  %s17_s18 = sshll.u32 %s309_s17, 4  ;;  %s30_s16 = int_to_ptr.vmem [resolvable:$true] %s29_s16  ;;  %s342_s18 = int_to_ptr.vmem [resolvable:$true] %s17_s18 }
   0x4   :  { %s214_s21 = scalar_lea.hbm %s410_s1, 256 }
   0x5   :  { %p215_p0 = scmp.ne.s32.totalorder %s410_s1, %s214_s21  ;;  %p218_p1 = scmp.lt.u32.totalorder %s214_s21, %s410_s1 }
   0x7   :  { %p220_p2 = pnand %p218_p1, %p215_p0 }
   0x9   :  { %223 = shalt.err (!%p220_p2)
}
   0xa   :  { %s224_s26 = scalar_lea.vmem %s30_s16, 256  ;;  %p229_p4 = scmp.lt.s32.totalorder %s30_s16, %s30_s16 }
   0xb   :  { %p225_p3 = scmp.ne.s32.totalorder %s30_s16, %s224_s26  ;;  %p230_p5 = scmp.lt.s32.totalorder %s224_s26, %s224_s26 }
   0xd   :  { %p231_p6 = por %p230_p5, %p229_p4 }
   0xf   :  { %p232_p7 = pnand %p231_p6, %p225_p3 }
  0x11   :  { %235 = shalt.err (!%p232_p7)
}
  0x12   :  { %s310_s27 = smov 128   ;;  %s311_s28 = smov 8  }
  0x13   :  { %35 = dma.hbm_to_vmem [thread:$0]  %s410_s1, 256, %s30_s16, [#allocation6], %s310_s27, %s310_s27, %s311_s28  }
  0x14   :  { %s236_s7 = scalar_lea.hbm %s409_s0, 256 }
  0x15   :  { %p237_p8 = scmp.ne.s32.totalorder %s409_s0, %s236_s7  ;;  %p240_p9 = scmp.lt.u32.totalorder %s236_s7, %s409_s0 }
  0x17   :  { %p242_p10 = pnand %p240_p9, %p237_p8 }
  0x19   :  { %245 = shalt.err (!%p242_p10)
}
  0x1a   :  { %s246_s12 = scalar_lea.vmem %s342_s18, 256  ;;  %p251_p12 = scmp.lt.s32.totalorder %s342_s18, %s342_s18 }
  0x1b   :  { %p247_p11 = scmp.ne.s32.totalorder %s342_s18, %s246_s12  ;;  %p252_p13 = scmp.lt.s32.totalorder %s246_s12, %s246_s12 }
  0x1d   :  { %p253_p0 = por %p252_p13, %p251_p12 }
  0x1f   :  { %p254_p1 = pnand %p253_p0, %p247_p11 }
  0x21   :  { %257 = shalt.err (!%p254_p1)
}
  0x22   :  { %23 = dma.hbm_to_vmem [thread:$0]  %s409_s0, 256, %s342_s18, [#allocation3], %s310_s27, %s310_s27, %s311_s28  }
  0x23   :  { %s312_s14 = smov [#allocation7]   ;;  %s258_s19 = scalar_lea.hbm %s411_s2, 1024 }
  0x24   :  { %s41_s15 = sshll.u32 %s312_s14, 4  ;;  %p259_p2 = scmp.ne.s32.totalorder %s411_s2, %s258_s19  ;;  %s42_s15 = int_to_ptr.vmem [resolvable:$true] %s41_s15 }
  0x25   :  { %p262_p3 = scmp.lt.u32.totalorder %s258_s19, %s411_s2 }
  0x27   :  { %p264_p4 = pnand %p262_p3, %p259_p2 }
  0x29   :  { %267 = shalt.err (!%p264_p4)
}
  0x2a   :  { %s268_s24 = scalar_lea.vmem %s42_s15, 1024  ;;  %p273_p6 = scmp.lt.s32.totalorder %s42_s15, %s42_s15 }
  0x2b   :  { %p269_p5 = scmp.ne.s32.totalorder %s42_s15, %s268_s24  ;;  %p274_p7 = scmp.lt.s32.totalorder %s268_s24, %s268_s24 }
  0x2d   :  { %p275_p8 = por %p274_p7, %p273_p6 }
  0x2f   :  { %p276_p9 = pnand %p275_p8, %p269_p5 }
  0x31   :  { %279 = shalt.err (!%p276_p9)
}
  0x32   :  { %s313_s0 = smov 256   ;;  %s314_s18 = smov 16  }
  0x33   :  { %47 = dma.hbm_to_vmem [thread:$0]  %s411_s2, 1024, %s42_s15, [#allocation6], %s313_s0, %s313_s0, %s314_s18  }
  0x34   :  { %302 = dma.done.wait [#allocation3], 256  }
  0x35   :  { %303 = vsyncadd [#allocation3], 4294967040 }
  0x36   :  { %304 = dma.done.wait [#allocation6], 1280  }
  0x37   :  { %305 = vsyncadd [#allocation6], 4294966016  ;;  %v315_v0 = vmov 0.0   ;;  %v62_v1 = vld [vmem:[#allocation7 + $0x8] sm:$0xff]  ;;  %v64_v2 = vld [vmem:[#allocation7 + $0x18] sm:$0xff]  ;;  %vm81_vm0 = vcmask 261120   ;;  %v71_v15 = vlaneseq }
  0x38   :  { %152 = vmatprep.mubr.f32.mxu0 %v315_v0  ;;  %158 = vmatprep.mubr.f32.mxu1 %v315_v0  ;;  %v61_v3 = vld [vmem:[#allocation7] sm:$0xff]  ;;  %v193_v4 = vpack.c.bf16 %v64_v2, %v62_v1  ;;  %v63_v5 = vld [vmem:[#allocation7 + $0x10] sm:$0xff]  ;;  %v66_v6 = vld [vmem:[#allocation7 + $0x28] sm:$0xff]  ;;  %s316_s30 = smov [#allocation8]  }
  0x39   :  { %v68_v7 = vld [vmem:[#allocation7 + $0x38] sm:$0xff]  ;;  %v195_v8 = vpack.c.bf16 %v63_v5, %v61_v3  ;;  %v65_v10 = vld [vmem:[#allocation7 + $0x20] sm:$0xff]  ;;  %v67_v11 = vld [vmem:[#allocation7 + $0x30] sm:$0xff]  ;;  %v72_v16 = vshrl.u32 %v71_v15, 7  ;;  %s178_s5 = sshll.u32 %s316_s30, 4  ;;  %s179_s5 = int_to_ptr.vmem [resolvable:$true] %s178_s5 }
  0x3a   :  { %v197_v9 = vpack.c.bf16 %v68_v7, %v66_v6  ;;  %194 = vmatprep.subr.bf16.mxu0 %v193_v4  ;;  %201 = vmatprep.subr.bf16.mxu1 %v193_v4  ;;  %v199_v12 = vpack.c.bf16 %v67_v11, %v65_v10  ;;  %v59_v13 = vld [vmem:[#allocation5] sm:$0xff]  ;;  %v60_v14 = vld [vmem:[#allocation5 + $0x8] sm:$0xff]  ;;  %v69_v18 = vld [vmem:[%s412_s3] sm:$0x3]  ;;  %s280_s3 = scalar_lea.vmem %s179_s5, 256  ;;  %p285_p11 = scmp.lt.s32.totalorder %s179_s5, %s179_s5 }
  0x3b   :  { %196 = vmatpush1.bf16.msra.mxu0 %v195_v8  ;;  %203 = vmatpush1.bf16.msra.mxu1 %v195_v8  ;;  %v73_v17 = vsub.s32 0, %v72_v16  ;;  %v77_v19 = vsub.s32 1, %v72_v16  ;;  %v165_v23 = vld [vmem:[#allocation2] sm:$0xff]  ;;  %v166_v25 = vld [vmem:[#allocation2 + $0x8] sm:$0xff]  ;;  %p281_p10 = scmp.ne.s32.totalorder %s179_s5, %s280_s3  ;;  %p286_p12 = scmp.lt.s32.totalorder %s280_s3, %s280_s3 }
  0x3c   :  { %198 = vmatprep.subr.bf16.mxu0 %v197_v9  ;;  %202 = vmatprep.subr.bf16.mxu1 %v197_v9 }
  0x3d   :  { %v74_v20 = vrot.slane %v69_v18, %v73_v17  ;;  %v78_v21 = vrot.slane %v69_v18, %v77_v19  ;;  %p287_p13 = por %p286_p12, %p285_p11 }
  0x3f   :  { %200 = vmatpush1.bf16.msra.mxu0 %v199_v12  ;;  %204 = vmatpush1.bf16.msra.mxu1 %v199_v12  ;;  %p288_p0 = pnand %p287_p13, %p281_p10 }
  0x42   :  { %191 = vmatmul.mubr.msk.f32.vlgmr.msra.gmra.mrb[0].mxu0 %vm81_vm0, %v59_v13  ;;  %192 = vmatmul.mubr.msk.f32.vlgmr.msra.gmra.mrb[0].mxu1 %vm81_vm0, %v60_v14 }
 0x115   :  { %v154_v22 = vpop.f32.mrb[0].mxu0  ;;  %v160_v24 = vpop.f32.mrb[0].mxu1 }
 0x116   :  { %v155_v26 = vadd.f32 %v154_v22, %v74_v20  ;;  %v161_v27 = vadd.f32 %v160_v24, %v74_v20  ;;  %v156_v28 = vpop.f32.mrb[1].mxu0  ;;  %v162_v29 = vpop.f32.mrb[1].mxu1 }
 0x117   :  { %v157_v30 = vadd.f32 %v156_v28, %v78_v21  ;;  %v163_v31 = vadd.f32 %v162_v29, %v78_v21 }
 0x118   :  { %v167_v32 = vmul.f32 %v165_v23, %v155_v26  ;;  %v168_v33 = vmul.f32 %v166_v25, %v161_v27 }
 0x11a   :  { %v169_v34 = vadd.f32 %v167_v32, %v157_v30  ;;  %v170_v35 = vadd.f32 %v168_v33, %v163_v31 }
 0x11c   :  { %171 = vst [vmem:[#allocation8] sm:$0xff] %v169_v34  ;;  %172 = vst [vmem:[#allocation8 + $0x8] sm:$0xff] %v170_v35 }
 0x11d   :  { %291 = shalt.err (!%p288_p0)
}
 0x11e   :  { %s292_s8 = scalar_lea.hbm %s413_s4, 256 }
 0x11f   :  { %p293_p1 = scmp.ne.s32.totalorder %s413_s4, %s292_s8  ;;  %p296_p2 = scmp.lt.u32.totalorder %s292_s8, %s413_s4 }
 0x121   :  { %p298_p3 = pnand %p296_p2, %p293_p1 }
 0x123   :  { %301 = shalt.err (!%p298_p3)
}
 0x124   :  { %184 = dma.vmem_to_hbm [thread:$0]  %s179_s5, 256, %s413_s4, [#allocation4], %s310_s27, %s310_s27, %s311_s28  }
 0x125   :  { %306 = dma.done.wait [#allocation4], 256  }
 0x126   :  { %307 = vsyncadd [#allocation4], 4294967040 }
 0x127   :  { %188 = vsyncpa [#allocation3], 1 }
 0x128   :  { %189 = vsyncpa [#allocation6], 1 }
 0x129   :  { %190 = vsyncpa [#allocation4], 1 }

</bundles_post_ra>
